<compile_context>
chip_gen: v5e
topology: v5e:2x2
jax: 0.10.0
libtpu: 0.0.40
codegen_flags: <defaults>
</compile_context>

<pallas_src>
import functools

import jax
import jax.numpy as jnp
from jax.experimental import pallas as pl
from jax.experimental.pallas import tpu as pltpu

_LN_EPS = 1e-5        # torch.nn.LayerNorm default eps
_GUMBEL_EPS = 1e-6    # eps added before log() in forward
_U_EPS = 1e-6         # keep uniforms strictly inside (0, 1)


def _ln_lanes(h, gamma, beta):
    """LayerNorm over the last (lane, =K) axis, fused single-pass statistics."""
    inv_k = 1.0 / h.shape[-1]
    s = jnp.sum(h, axis=-1, keepdims=True)
    s2 = jnp.sum(h * h, axis=-1, keepdims=True)
    mu = s * inv_k
    var = s2 * inv_k - mu * mu
    return (h - mu) * jax.lax.rsqrt(var + _LN_EPS) * gamma + beta


def _make_kernel(K, f1, f2, f3, samples):
    n_draws = samples + 2          # bc rows + bc1 + bc2
    r1, r2, r3 = f1, f1 + f2, f1 + f2 + f3

    def kernel(t_ref, u_ref, lnx_ref, w_ref, out_ref):
        inv_t = 1.0 / t_ref[0]

        lnx = lnx_ref[...]                        # (7, K) = g1,b1,g2,b2,g3,b3,x
        g1, b1 = lnx[0:1, :], lnx[1:2, :]
        g2, b2 = lnx[2:3, :], lnx[3:4, :]
        g3, b3 = lnx[4:5, :], lnx[5:6, :]
        x = lnx[6:7, :]                           # (1, K)

        w1 = w_ref[0:r1, 0:1]                     # (f1, 1)
        w2 = w_ref[r1:r2, 0:f1]                   # (f2, f1)
        w3 = w_ref[r2:r3, 0:f2]                   # (f3, f2)
        wc = w_ref[r3:r3 + 2, 0:f3]               # (2,  f3)

        # L1 (outer product, bias=False) + N1, algebraically folded (exact):
        #   LN_k(w1_i * x_k) = w1_i*(x_k - mu_x) * rsqrt(w1_i^2 * var_x + eps)
        inv_k = 1.0 / K
        sx = jnp.sum(x, axis=-1, keepdims=True)
        sxx = jnp.sum(x * x, axis=-1, keepdims=True)
        mu_x = sx * inv_k
        var_x = sxx * inv_k - mu_x * mu_x
        xc = x - mu_x
        h = (w1 * xc) * jax.lax.rsqrt(w1 * w1 * var_x + _LN_EPS) * g1 + b1   # (f1, K)

        # A1: ReLU -> L2 ; N2
        h = jnp.dot(w2, jnp.maximum(h, 0.0), preferred_element_type=jnp.float32)
        h = _ln_lanes(h, g2, b2)                                             # (f2, K)
        # A2: ReLU -> L3 ; N3
        h = jnp.dot(w3, jnp.maximum(h, 0.0), preferred_element_type=jnp.float32)
        h = _ln_lanes(h, g3, b3)                                             # (f3, K)
        # A3: ReLU ; conc: Linear(f3 -> 2)
        out = jnp.dot(wc, jnp.maximum(h, 0.0),
                      preferred_element_type=jnp.float32)                    # (2, K)

        imp = jnp.exp(out)
        imp0, imp1 = imp[0:1, :], imp[1:2, :]
        impo = imp1 / (imp0 + imp1)                                          # (1, K)

        a_diff = jnp.log(imp1 + _GUMBEL_EPS) - jnp.log(imp0 + _GUMBEL_EPS)   # (1, K)

        # Binary-concrete samples via the logistic identity (one uniform each).
        u = u_ref[...]                                                       # (n_draws, K)
        logistic = jnp.log(u) - jnp.log(1.0 - u)
        z = (logistic + a_diff) * inv_t
        bc_all = 0.5 * jnp.tanh(0.5 * z) + 0.5                               # in [0, 1]

        # Direct sub-slice stores; padded region of the slab is never touched.
        out_ref[0:n_draws, 0:K] = bc_all
        out_ref[n_draws:n_draws + 1, 0:K] = impo

    return kernel


def init_params(key, K, f_dim):
    """Deterministic parameter init (shapes from the module's __init__)."""
    k1, k2, k3, k4 = jax.random.split(key, 4)

    def lin(k, fan_out, fan_in):  # torch Linear default: U(-1/sqrt(fan_in), +)
        b = 1.0 / float(fan_in) ** 0.5
        return jax.random.uniform(k, (fan_out, fan_in), jnp.float32, -b, b)

    ones = jnp.ones((1, K), jnp.float32)
    zeros = jnp.zeros((1, K), jnp.float32)
    return dict(
        w1=lin(k1, f_dim[1], f_dim[0]),   # (f1, 1)
        w2=lin(k2, f_dim[2], f_dim[1]),   # (f2, f1)
        w3=lin(k3, f_dim[3], f_dim[2]),   # (f3, f2)
        wc=lin(k4, 2, f_dim[3]),          # (2, f3)
        g1=ones, b1=zeros, g2=ones, b2=zeros, g3=ones, b3=zeros,
    )


def _pack_inputs(params, x):
    """Consolidate parameters + x into two dense VMEM slabs."""
    K = x.shape[0]
    w1, w2, w3, wc = params["w1"], params["w2"], params["w3"], params["wc"]
    f1, f2, f3 = w2.shape[1], w3.shape[1], wc.shape[1]
    fmax = max(f1, f2, f3)

    def pad_cols(w):
        return jnp.pad(w, ((0, 0), (0, fmax - w.shape[1])))

    w_slab = jnp.concatenate(
        [pad_cols(w1), pad_cols(w2), pad_cols(w3), pad_cols(wc)],
        axis=0).astype(jnp.float32)                      # (f1+f2+f3+2, fmax)
    lnx = jnp.concatenate(
        [params["g1"], params["b1"], params["g2"], params["b2"],
         params["g3"], params["b3"], x.reshape(1, K)],
        axis=0).astype(jnp.float32)                      # (7, K)
    return lnx, w_slab


@functools.partial(jax.jit, static_argnames=("samples",))
def network_forward(params, x, T, key, *, samples):
    """Returns (bc (samples,K), bc1 (1,K), bc2 (1,K), imp_o (K,))."""
    K = x.shape[0]
    f1 = params["w1"].shape[0]
    f2 = params["w2"].shape[0]
    f3 = params["w3"].shape[0]

    n_draws = samples + 2
    n_rows = samples + 3
    rows_pad = -(-n_rows // 8) * 8          # sublane-aligned output slab
    k_pad = -(-K // 128) * 128              # lane-dense output slab

    lnx, w_slab = _pack_inputs(params, x)
    t_arr = jnp.asarray(T, jnp.float32).reshape(1)
    u = jax.random.uniform(key, (n_draws, K), jnp.float32,
                           minval=_U_EPS, maxval=1.0 - _U_EPS)

    kernel = _make_kernel(K, f1, f2, f3, samples)
    smem = pl.BlockSpec(memory_space=pltpu.MemorySpace.SMEM)
    vmem = pl.BlockSpec(memory_space=pltpu.MemorySpace.VMEM)

    out = pl.pallas_call(
        kernel,
        out_shape=jax.ShapeDtypeStruct((rows_pad, k_pad), jnp.float32),
        in_specs=[smem, vmem, vmem, vmem],
        out_specs=vmem,
    )(t_arr, u, lnx, w_slab)

    bc = out[0:samples, 0:K]
    bc1 = out[samples:samples + 1, 0:K]
    bc2 = out[samples + 1:samples + 2, 0:K]
    imp_o = out[samples + 2, 0:K]
    return bc, bc1, bc2, imp_o


def reference_forward(params, x, T, key, samples):
    """Pure-JAX reference (un-folded L1+N1, same uniforms as the kernel)."""
    K = x.shape[0]
    x_row = x.reshape(1, K)
    h = params["w1"] * x_row
    h = _ln_lanes(h, params["g1"], params["b1"])
    h = params["w2"] @ jnp.maximum(h, 0.0)
    h = _ln_lanes(h, params["g2"], params["b2"])
    h = params["w3"] @ jnp.maximum(h, 0.0)
    h = _ln_lanes(h, params["g3"], params["b3"])
    out = params["wc"] @ jnp.maximum(h, 0.0)
    imp = jnp.exp(out)
    imp0, imp1 = imp[0:1, :], imp[1:2, :]
    impo = imp1 / (imp0 + imp1)
    a_diff = jnp.log(imp1 + _GUMBEL_EPS) - jnp.log(imp0 + _GUMBEL_EPS)

    n_draws = samples + 2
    u = jax.random.uniform(key, (n_draws, K), jnp.float32,
                           minval=_U_EPS, maxval=1.0 - _U_EPS)
    z = (jnp.log(u) - jnp.log(1.0 - u) + a_diff) / T
    bc_all = jax.nn.sigmoid(z)
    return (bc_all[0:samples], bc_all[samples:samples + 1],
            bc_all[samples + 1:samples + 2], impo[0])


if __name__ == "__main__":
    K = 16                      # number of nodes (LayerNorm normalized dim)
    f_dim = [1, 32, 32, 32]     # f_dim[0] must be 1 (x.unsqueeze(1) -> (K,1))
    samples = 4
    T = 0.5

    key = jax.random.PRNGKey(0)
    pkey, xkey, ukey = jax.random.split(key, 3)
    params = init_params(pkey, K, f_dim)
    x = jax.random.normal(xkey, (K,), jnp.float32)

    outs = network_forward(params, x, T, ukey, samples=samples)
    outs = jax.block_until_ready(outs)
    bc, bc1, bc2, imp_o = outs

    assert bc.shape == (samples, K)
    assert bc1.shape == (1, K) and bc2.shape == (1, K)
    assert imp_o.shape == (K,)

    ref_bc, ref_bc1, ref_bc2, ref_imp = reference_forward(params, x, T, ukey, samples)

    # Deterministic path must match the reference.
    assert bool(jnp.all(jnp.isfinite(imp_o)))
    assert bool(jnp.allclose(imp_o, ref_imp, rtol=2e-3, atol=1e-5))
    assert bool(jnp.all((imp_o > 0.0) & (imp_o < 1.0)))

    # Stochastic path: same uniforms as the reference -> must match closely,
    # and the tanh/sigmoid form is bounded in [0, 1] by construction.
    for z_k, z_r in ((bc, ref_bc), (bc1, ref_bc1), (bc2, ref_bc2)):
        assert bool(jnp.all(jnp.isfinite(z_k)))
        assert bool(jnp.all((z_k >= 0.0) & (z_k <= 1.0)))
        assert bool(jnp.allclose(z_k, z_r, rtol=5e-3, atol=1e-3))

    print("KERNEL_OK")
</pallas_src>

<mosaic_0001>
module attributes {stable_mosaic.version = 11 : i64} {
  func.func @kernel(%arg0: memref<1xf32, #tpu.memory_space<smem>>, %arg1: memref<6x16xf32, #tpu.memory_space<vmem>>, %arg2: memref<7x16xf32, #tpu.memory_space<vmem>>, %arg3: memref<98x32xf32, #tpu.memory_space<vmem>>, %arg4: memref<8x128xf32, #tpu.memory_space<vmem>>) attributes {dimension_semantics = [], scalar_prefetch = 0 : i64, scratch_operands = 0 : i64, tpu.core_type = #tpu.core_type<tc>} {
    %c0 = arith.constant 0 : index
    %0 = memref.load %arg0[%c0] : memref<1xf32, #tpu.memory_space<smem>>
    %cst = arith.constant 1.000000e+00 : f32
    %1 = arith.divf %cst, %0 : f32
    %c0_0 = arith.constant 0 : index
    %c0_1 = arith.constant 0 : index
    %2 = vector.load %arg2[%c0_0, %c0_1] : memref<7x16xf32, #tpu.memory_space<vmem>>, vector<7x16xf32>
    %3 = vector.extract_strided_slice %2 {offsets = [0, 0], sizes = [1, 16], strides = [1, 1]} : vector<7x16xf32> to vector<1x16xf32>
    %4 = vector.extract_strided_slice %2 {offsets = [1, 0], sizes = [1, 16], strides = [1, 1]} : vector<7x16xf32> to vector<1x16xf32>
    %5 = vector.extract_strided_slice %2 {offsets = [2, 0], sizes = [1, 16], strides = [1, 1]} : vector<7x16xf32> to vector<1x16xf32>
    %6 = vector.extract_strided_slice %2 {offsets = [3, 0], sizes = [1, 16], strides = [1, 1]} : vector<7x16xf32> to vector<1x16xf32>
    %7 = vector.extract_strided_slice %2 {offsets = [4, 0], sizes = [1, 16], strides = [1, 1]} : vector<7x16xf32> to vector<1x16xf32>
    %8 = vector.extract_strided_slice %2 {offsets = [5, 0], sizes = [1, 16], strides = [1, 1]} : vector<7x16xf32> to vector<1x16xf32>
    %9 = vector.extract_strided_slice %2 {offsets = [6, 0], sizes = [1, 16], strides = [1, 1]} : vector<7x16xf32> to vector<1x16xf32>
    %c0_2 = arith.constant 0 : index
    %c0_3 = arith.constant 0 : index
    %10 = vector.load %arg3[%c0_2, %c0_3] : memref<98x32xf32, #tpu.memory_space<vmem>>, vector<32x1xf32>
    %c32 = arith.constant 32 : index
    %c0_4 = arith.constant 0 : index
    %11 = vector.load %arg3[%c32, %c0_4] : memref<98x32xf32, #tpu.memory_space<vmem>>, vector<32x32xf32>
    %c64 = arith.constant 64 : index
    %c0_5 = arith.constant 0 : index
    %12 = vector.load %arg3[%c64, %c0_5] : memref<98x32xf32, #tpu.memory_space<vmem>>, vector<32x32xf32>
    %c96 = arith.constant 96 : index
    %c0_6 = arith.constant 0 : index
    %13 = vector.load %arg3[%c96, %c0_6] : memref<98x32xf32, #tpu.memory_space<vmem>>, vector<2x32xf32>
    %cst_7 = arith.constant dense<0.000000e+00> : vector<1xf32>
    %14 = vector.multi_reduction <add>, %9, %cst_7 [1] : vector<1x16xf32> to vector<1xf32>
    %15 = vector.shape_cast %14 : vector<1xf32> to vector<1x1xf32>
    %16 = arith.mulf %9, %9 : vector<1x16xf32>
    %cst_8 = arith.constant dense<0.000000e+00> : vector<1xf32>
    %17 = vector.multi_reduction <add>, %16, %cst_8 [1] : vector<1x16xf32> to vector<1xf32>
    %18 = vector.shape_cast %17 : vector<1xf32> to vector<1x1xf32>
    %cst_9 = arith.constant 6.250000e-02 : f32
    %19 = vector.broadcast %cst_9 : f32 to vector<1x1xf32>
    %20 = arith.mulf %15, %19 : vector<1x1xf32>
    %cst_10 = arith.constant 6.250000e-02 : f32
    %21 = vector.broadcast %cst_10 : f32 to vector<1x1xf32>
    %22 = arith.mulf %18, %21 : vector<1x1xf32>
    %23 = arith.mulf %20, %20 : vector<1x1xf32>
    %24 = arith.subf %22, %23 : vector<1x1xf32>
    %25 = vector.broadcast %20 : vector<1x1xf32> to vector<1x16xf32>
    %26 = arith.subf %9, %25 : vector<1x16xf32>
    %27 = vector.broadcast %10 : vector<32x1xf32> to vector<32x16xf32>
    %28 = vector.broadcast %26 : vector<1x16xf32> to vector<32x16xf32>
    %29 = arith.mulf %27, %28 : vector<32x16xf32>
    %30 = arith.mulf %10, %10 : vector<32x1xf32>
    %31 = vector.broadcast %24 : vector<1x1xf32> to vector<32x1xf32>
    %32 = arith.mulf %30, %31 : vector<32x1xf32>
    %cst_11 = arith.constant 9.99999974E-6 : f32
    %33 = vector.broadcast %cst_11 : f32 to vector<32x1xf32>
    %34 = arith.addf %32, %33 : vector<32x1xf32>
    %35 = math.rsqrt %34 : vector<32x1xf32>
    %36 = vector.broadcast %35 : vector<32x1xf32> to vector<32x16xf32>
    %37 = arith.mulf %29, %36 : vector<32x16xf32>
    %38 = vector.broadcast %3 : vector<1x16xf32> to vector<32x16xf32>
    %39 = arith.mulf %37, %38 : vector<32x16xf32>
    %40 = vector.broadcast %4 : vector<1x16xf32> to vector<32x16xf32>
    %41 = arith.addf %39, %40 : vector<32x16xf32>
    %cst_12 = arith.constant 0.000000e+00 : f32
    %42 = vector.broadcast %cst_12 : f32 to vector<32x16xf32>
    %43 = arith.maximumf %41, %42 : vector<32x16xf32>
    %cst_13 = arith.constant dense<0.000000e+00> : vector<32x16xf32>
    %44 = tpu.matmul %11, %43, %cst_13 {dimension_numbers = #tpu.dot_dimension_numbers<[1], [0], [0], [1], [0, 0, 1, 1], [], []>} : vector<32x32xf32>, vector<32x16xf32>, vector<32x16xf32> -> vector<32x16xf32>
    %cst_14 = arith.constant dense<0.000000e+00> : vector<32xf32>
    %45 = vector.multi_reduction <add>, %44, %cst_14 [1] : vector<32x16xf32> to vector<32xf32>
    %46 = vector.shape_cast %45 : vector<32xf32> to vector<32x1xf32>
    %47 = arith.mulf %44, %44 : vector<32x16xf32>
    %cst_15 = arith.constant dense<0.000000e+00> : vector<32xf32>
    %48 = vector.multi_reduction <add>, %47, %cst_15 [1] : vector<32x16xf32> to vector<32xf32>
    %49 = vector.shape_cast %48 : vector<32xf32> to vector<32x1xf32>
    %cst_16 = arith.constant 6.250000e-02 : f32
    %50 = vector.broadcast %cst_16 : f32 to vector<32x1xf32>
    %51 = arith.mulf %46, %50 : vector<32x1xf32>
    %cst_17 = arith.constant 6.250000e-02 : f32
    %52 = vector.broadcast %cst_17 : f32 to vector<32x1xf32>
    %53 = arith.mulf %49, %52 : vector<32x1xf32>
    %54 = arith.mulf %51, %51 : vector<32x1xf32>
    %55 = arith.subf %53, %54 : vector<32x1xf32>
    %56 = vector.broadcast %51 : vector<32x1xf32> to vector<32x16xf32>
    %57 = arith.subf %44, %56 : vector<32x16xf32>
    %cst_18 = arith.constant 9.99999974E-6 : f32
    %58 = vector.broadcast %cst_18 : f32 to vector<32x1xf32>
    %59 = arith.addf %55, %58 : vector<32x1xf32>
    %60 = math.rsqrt %59 : vector<32x1xf32>
    %61 = vector.broadcast %60 : vector<32x1xf32> to vector<32x16xf32>
    %62 = arith.mulf %57, %61 : vector<32x16xf32>
    %63 = vector.broadcast %5 : vector<1x16xf32> to vector<32x16xf32>
    %64 = arith.mulf %62, %63 : vector<32x16xf32>
    %65 = vector.broadcast %6 : vector<1x16xf32> to vector<32x16xf32>
    %66 = arith.addf %64, %65 : vector<32x16xf32>
    %cst_19 = arith.constant 0.000000e+00 : f32
    %67 = vector.broadcast %cst_19 : f32 to vector<32x16xf32>
    %68 = arith.maximumf %66, %67 : vector<32x16xf32>
    %cst_20 = arith.constant dense<0.000000e+00> : vector<32x16xf32>
    %69 = tpu.matmul %12, %68, %cst_20 {dimension_numbers = #tpu.dot_dimension_numbers<[1], [0], [0], [1], [0, 0, 1, 1], [], []>} : vector<32x32xf32>, vector<32x16xf32>, vector<32x16xf32> -> vector<32x16xf32>
    %cst_21 = arith.constant dense<0.000000e+00> : vector<32xf32>
    %70 = vector.multi_reduction <add>, %69, %cst_21 [1] : vector<32x16xf32> to vector<32xf32>
    %71 = vector.shape_cast %70 : vector<32xf32> to vector<32x1xf32>
    %72 = arith.mulf %69, %69 : vector<32x16xf32>
    %cst_22 = arith.constant dense<0.000000e+00> : vector<32xf32>
    %73 = vector.multi_reduction <add>, %72, %cst_22 [1] : vector<32x16xf32> to vector<32xf32>
    %74 = vector.shape_cast %73 : vector<32xf32> to vector<32x1xf32>
    %cst_23 = arith.constant 6.250000e-02 : f32
    %75 = vector.broadcast %cst_23 : f32 to vector<32x1xf32>
    %76 = arith.mulf %71, %75 : vector<32x1xf32>
    %cst_24 = arith.constant 6.250000e-02 : f32
    %77 = vector.broadcast %cst_24 : f32 to vector<32x1xf32>
    %78 = arith.mulf %74, %77 : vector<32x1xf32>
    %79 = arith.mulf %76, %76 : vector<32x1xf32>
    %80 = arith.subf %78, %79 : vector<32x1xf32>
    %81 = vector.broadcast %76 : vector<32x1xf32> to vector<32x16xf32>
    %82 = arith.subf %69, %81 : vector<32x16xf32>
    %cst_25 = arith.constant 9.99999974E-6 : f32
    %83 = vector.broadcast %cst_25 : f32 to vector<32x1xf32>
    %84 = arith.addf %80, %83 : vector<32x1xf32>
    %85 = math.rsqrt %84 : vector<32x1xf32>
    %86 = vector.broadcast %85 : vector<32x1xf32> to vector<32x16xf32>
    %87 = arith.mulf %82, %86 : vector<32x16xf32>
    %88 = vector.broadcast %7 : vector<1x16xf32> to vector<32x16xf32>
    %89 = arith.mulf %87, %88 : vector<32x16xf32>
    %90 = vector.broadcast %8 : vector<1x16xf32> to vector<32x16xf32>
    %91 = arith.addf %89, %90 : vector<32x16xf32>
    %cst_26 = arith.constant 0.000000e+00 : f32
    %92 = vector.broadcast %cst_26 : f32 to vector<32x16xf32>
    %93 = arith.maximumf %91, %92 : vector<32x16xf32>
    %cst_27 = arith.constant dense<0.000000e+00> : vector<2x16xf32>
    %94 = tpu.matmul %13, %93, %cst_27 {dimension_numbers = #tpu.dot_dimension_numbers<[1], [0], [0], [1], [0, 0, 1, 1], [], []>} : vector<2x32xf32>, vector<32x16xf32>, vector<2x16xf32> -> vector<2x16xf32>
    %95 = math.exp %94 : vector<2x16xf32>
    %96 = vector.extract_strided_slice %95 {offsets = [0, 0], sizes = [1, 16], strides = [1, 1]} : vector<2x16xf32> to vector<1x16xf32>
    %97 = vector.extract_strided_slice %95 {offsets = [1, 0], sizes = [1, 16], strides = [1, 1]} : vector<2x16xf32> to vector<1x16xf32>
    %98 = arith.addf %96, %97 : vector<1x16xf32>
    %99 = arith.divf %97, %98 : vector<1x16xf32>
    %cst_28 = arith.constant 9.99999997E-7 : f32
    %100 = vector.broadcast %cst_28 : f32 to vector<1x16xf32>
    %101 = arith.addf %97, %100 : vector<1x16xf32>
    %102 = math.log %101 : vector<1x16xf32>
    %cst_29 = arith.constant 9.99999997E-7 : f32
    %103 = vector.broadcast %cst_29 : f32 to vector<1x16xf32>
    %104 = arith.addf %96, %103 : vector<1x16xf32>
    %105 = math.log %104 : vector<1x16xf32>
    %106 = arith.subf %102, %105 : vector<1x16xf32>
    %c0_30 = arith.constant 0 : index
    %c0_31 = arith.constant 0 : index
    %107 = vector.load %arg1[%c0_30, %c0_31] : memref<6x16xf32, #tpu.memory_space<vmem>>, vector<6x16xf32>
    %108 = math.log %107 : vector<6x16xf32>
    %cst_32 = arith.constant 1.000000e+00 : f32
    %109 = vector.broadcast %cst_32 : f32 to vector<6x16xf32>
    %110 = arith.subf %109, %107 : vector<6x16xf32>
    %111 = math.log %110 : vector<6x16xf32>
    %112 = arith.subf %108, %111 : vector<6x16xf32>
    %113 = vector.broadcast %106 : vector<1x16xf32> to vector<6x16xf32>
    %114 = arith.addf %112, %113 : vector<6x16xf32>
    %115 = vector.broadcast %1 : f32 to vector<6x16xf32>
    %116 = arith.mulf %114, %115 : vector<6x16xf32>
    %cst_33 = arith.constant 5.000000e-01 : f32
    %117 = vector.broadcast %cst_33 : f32 to vector<6x16xf32>
    %118 = arith.mulf %117, %116 : vector<6x16xf32>
    %119 = math.tanh %118 : vector<6x16xf32>
    %cst_34 = arith.constant 5.000000e-01 : f32
    %120 = vector.broadcast %cst_34 : f32 to vector<6x16xf32>
    %121 = arith.mulf %120, %119 : vector<6x16xf32>
    %cst_35 = arith.constant 5.000000e-01 : f32
    %122 = vector.broadcast %cst_35 : f32 to vector<6x16xf32>
    %123 = arith.addf %121, %122 : vector<6x16xf32>
    %c0_36 = arith.constant 0 : index
    %c0_37 = arith.constant 0 : index
    %124 = vector.load %arg4[%c0_36, %c0_37] : memref<8x128xf32, #tpu.memory_space<vmem>>, vector<6x16xf32>
    tpu.vector_store %arg4[%c0_36, %c0_37], %123 {strides = array<i32>} : memref<8x128xf32, #tpu.memory_space<vmem>>, vector<6x16xf32>,
    %c6 = arith.constant 6 : index
    %c0_38 = arith.constant 0 : index
    %125 = vector.load %arg4[%c6, %c0_38] : memref<8x128xf32, #tpu.memory_space<vmem>>, vector<1x16xf32>
    tpu.vector_store %arg4[%c6, %c0_38], %99 {strides = array<i32>} : memref<8x128xf32, #tpu.memory_space<vmem>>, vector<1x16xf32>,
    return
  }
}

</mosaic_0001>

<bundles_post_ra>
// kernel: network_forward.1
= control target key start
LH: loop header
LB: loop body
LE: loop exit
PB: predicated region body
PF: predicated region fallthrough
CT: control target
= control target key end

     0   :  { %vm49_vm0 = vcmask 129030   ;;  %v620_v0 = vmov 0   ;;  %vm178_vm13 = vcmask 261120   ;;  %vm220_vm14 = vcmask 130048   ;;  %s829_s3 = inlined_call_operand.vmem [shape: f32[98,32], index: 3, kind: input, shape index: {}]   ;;  %s830_s2 = inlined_call_operand.vmem [shape: f32[7,16], index: 2, kind: input, shape index: {}]   ;;  %s831_s0 = inlined_call_operand.<no memory space> [shape: f32[1], index: 0, kind: input, shape index: {}]   ;;  %s832_s1 = inlined_call_operand.vmem [shape: f32[6,16], index: 1, kind: input, shape index: {}]   ;;  %s833_s4 = inlined_call_operand.vmem [shape: f32[8,128], index: 4, kind: output, shape index: {}]  }
   0x1   :  { %579 = vset.pattern.permute.xlu1 %v620_v0  ;;  %v39_v1 = vld [vmem:[%s829_s3 + $0x18] sm:$0xff]  ;;  %v652_v2 = vld [vmem:[%s830_s2] sm:$0x7f]  ;;  %580 = vset.pattern.permute.xlu2 %v620_v0  ;;  %v37_v4 = vld [vmem:[%s829_s3 + $0x8] sm:$0xff] }
   0x2   :  { %79 = vperm.xlu1 %579, %v39_v1   ;;  %v50_v3 = vsel %vm49_vm0, %v652_v2, 0.0  ;;  %581 = vset.pattern.permute.xlu0 %v620_v0  ;;  %v53_v5 = vmul.f32 %v652_v2, %v652_v2  ;;  %v38_v6 = vld [vmem:[%s829_s3 + $0x10] sm:$0xff]  ;;  %v36_v8 = vld [vmem:[%s829_s3] sm:$0xff]  ;;  %v90_v14 = vmul.f32 %v39_v1, %v39_v1  ;;  %v88_v18 = vmul.f32 %v37_v4, %v37_v4 }
   0x3   :  { %51 = vadd.xlane.f32.xlu0 %v50_v3  ;;  %69 = vperm.xlu2 %580, %v37_v4   ;;  %v89_v15 = vmul.f32 %v38_v6, %v38_v6  ;;  %v87_v16 = vmul.f32 %v36_v8, %v36_v8  ;;  %v164_v61 = vperm.slane %v652_v2, 0  ;;  %v169_v0 = vperm.slane %v652_v2, 1 }
   0x4   :  { %v54_v7 = vsel %vm49_vm0, %v53_v5, 0.0 }
   0xa   :  { %74 = vperm.xlu1 %579, %v38_v6  }
   0xb   :  { %55 = vadd.xlane.f32.xlu0 %v54_v7 }
  0x12   :  { %64 = vperm.xlu1 %579, %v36_v8  }
  0x5d   :  { %v70_v57 = vpop.permute.xlu2 %69 }
  0x74   :  { %v80_v59 = vpop.permute.xlu1 %79 }
  0x76   :  { %v52_v9 = vpop.xlane.xlu0 %51 }
  0x77   :  { %v666_v10 = vmul.f32 0.0625, %v52_v9 }
  0x79   :  { %v59_v12 = vmul.f32 %v666_v10, %v666_v10  ;;  %v61_v56 = vsub.f32 %v652_v2, %v666_v10 }
  0x7b   :  { %v82_v58 = vperm.slane %v61_v56, 6 }
  0x7c   :  { %v75_v5 = vpop.permute.xlu1 %74 }
  0x7d   :  { %v86_v60 = vmul.f32 %v82_v58, %v80_v59  ;;  %v84_v8 = vmul.f32 %v82_v58, %v70_v57  ;;  %v85_v10 = vmul.f32 %v82_v58, %v75_v5 }
  0x7e   :  { %v56_v11 = vpop.xlane.xlu0 %55 }
  0x7f   :  { %v58_v13 = vmul.f32 0.0625, %v56_v11 }
  0x81   :  { %v60_v17 = vsub.f32 %v58_v13, %v59_v12 }
  0x83   :  { %v91_v19 = vperm.slane %v60_v17, 6 }
  0x84   :  { %v65_v6 = vpop.permute.xlu1 %64 }
  0x85   :  { %v95_v20 = vmul.f32 %v91_v19, %v90_v14  ;;  %v94_v21 = vmul.f32 %v91_v19, %v89_v15  ;;  %v92_v22 = vmul.f32 %v91_v19, %v87_v16  ;;  %v93_v23 = vmul.f32 %v91_v19, %v88_v18 }
  0x86   :  { %v83_v11 = vmul.f32 %v82_v58, %v65_v6 }
  0x87   :  { %v99_v24 = vadd.f32 1e-05, %v95_v20  ;;  %v98_v25 = vadd.f32 1e-05, %v94_v21  ;;  %v96_v26 = vadd.f32 1e-05, %v92_v22 }
  0x88   :  { %v97_v27 = vadd.f32 1e-05, %v93_v23 }
  0x89   :  { %582 = vrsqrt.f32 %v99_v24  ;;  %vm136_vm3 = vweird.f32 %v99_v24  ;;  %vm126_vm6 = vweird.f32 %v98_v25  ;;  %vm106_vm8 = vweird.f32 %v96_v26 }
  0x8a   :  { %584 = vrsqrt.f32 %v98_v25  ;;  %vm116_vm11 = vweird.f32 %v97_v27 }
  0x8b   :  { %586 = vrsqrt.f32 %v96_v26 }
  0x8c   :  { %588 = vrsqrt.f32 %v97_v27 }
  0x8f   :  { %v583_v28 = vpop.eup %582 }
  0x90   :  { %v585_v29 = vpop.eup %584  ;;  %v131_v30 = vmul.f32 %v583_v28, %v99_v24  ;;  %vm137_vm1 = vweird.f32 %v583_v28 }
  0x91   :  { %v587_v31 = vpop.eup %586  ;;  %v121_v32 = vmul.f32 %v585_v29, %v98_v25  ;;  %vm127_vm2 = vweird.f32 %v585_v29  ;;  %vm138_vm5 = vmor %vm136_vm3, %vm137_vm1  ;;  %v41_v25 = vld [vmem:[%s829_s3 + $0x28] sm:$0xff] }
  0x92   :  { %v589_v33 = vpop.eup %588  ;;  %v132_v34 = vmul.f32 %v583_v28, %v131_v30  ;;  %v101_v35 = vmul.f32 %v587_v31, %v96_v26  ;;  %vm107_vm4 = vweird.f32 %v587_v31  ;;  %vm128_vm7 = vmor %vm126_vm6, %vm127_vm2  ;;  %v40_v26 = vld [vmem:[%s829_s3 + $0x20] sm:$0xff] }
  0x93   :  { %v122_v36 = vmul.f32 %v585_v29, %v121_v32  ;;  %v111_v37 = vmul.f32 %v589_v33, %v97_v27  ;;  %vm108_vm9 = vmor %vm106_vm8, %vm107_vm4  ;;  %vm117_vm10 = vweird.f32 %v589_v33  ;;  %v42_v27 = vld [vmem:[%s829_s3 + $0x30] sm:$0xff] }
  0x94   :  { %v133_v38 = vmul.f32 0.5, %v132_v34  ;;  %v102_v39 = vmul.f32 %v587_v31, %v101_v35  ;;  %vm118_vm12 = vmor %vm116_vm11, %vm117_vm10 }
  0x95   :  { %v123_v40 = vmul.f32 0.5, %v122_v36  ;;  %v112_v41 = vmul.f32 %v589_v33, %v111_v37 }
  0x96   :  { %v134_v42 = vsub.f32 1.5, %v133_v38  ;;  %v103_v43 = vmul.f32 0.5, %v102_v39 }
  0x97   :  { %v124_v44 = vsub.f32 1.5, %v123_v40  ;;  %v113_v45 = vmul.f32 0.5, %v112_v41 }
  0x98   :  { %v135_v46 = vmul.f32 %v583_v28, %v134_v42  ;;  %v104_v47 = vsub.f32 1.5, %v103_v43 }
  0x99   :  { %v125_v48 = vmul.f32 %v585_v29, %v124_v44  ;;  %v114_v51 = vsub.f32 1.5, %v113_v45 }
  0x9a   :  { %v139_v49 = vsel %vm138_vm5, %v583_v28, %v135_v46  ;;  %v105_v50 = vmul.f32 %v587_v31, %v104_v47  ;;  %v43_v28 = vld [vmem:[%s829_s3 + $0x38] sm:$0xff] }
  0x9b   :  { %157 = vperm.xlu2 %580, %v139_v49   ;;  %v129_v52 = vsel %vm128_vm7, %v585_v29, %v125_v48  ;;  %v115_v54 = vmul.f32 %v589_v33, %v114_v51 }
  0x9c   :  { %152 = vperm.xlu0 %581, %v129_v52   ;;  %v109_v53 = vsel %vm108_vm9, %v587_v31, %v105_v50 }
  0x9d   :  { %142 = vperm.xlu1 %579, %v109_v53   ;;  %v119_v55 = vsel %vm118_vm12, %v589_v33, %v115_v54 }
  0xa3   :  { %147 = vperm.xlu2 %580, %v119_v55  }
  0xf5   :  { %v158_v62 = vpop.permute.xlu2 %157 }
  0xf6   :  { %v163_v63 = vmul.f32 %v158_v62, %v86_v60 }
  0xf8   :  { %v168_v1 = vmul.f32 %v164_v61, %v163_v63 }
  0xfa   :  { %v173_v3 = vadd.f32 %v169_v0, %v168_v1 }
  0xfc   :  { %v177_v4 = vmax.f32 %v173_v3, 0.0 }
  0xfd   :  { %v148_v7 = vpop.permute.xlu2 %147 }
  0xfe   :  { %203 = vmatpush.msra.mxu0 %v177_v4  ;;  %568 = vmatpush.msra.mxu3 %v177_v4  ;;  %v161_v9 = vmul.f32 %v148_v7, %v84_v8 }
 0x100   :  { %v166_v13 = vmul.f32 %v164_v61, %v161_v9 }
 0x102   :  { %v171_v20 = vadd.f32 %v169_v0, %v166_v13 }
 0x104   :  { %v175_v23 = vmax.f32 %v171_v20, 0.0 }
 0x10e   :  { %v153_v12 = vpop.permute.xlu0 %152 }
 0x10f   :  { %v162_v14 = vmul.f32 %v153_v12, %v85_v10  ;;  %v143_v15 = vpop.permute.xlu1 %142 }
 0x110   :  { %v160_v16 = vmul.f32 %v143_v15, %v83_v11 }
 0x111   :  { %v167_v17 = vmul.f32 %v164_v61, %v162_v14 }
 0x112   :  { %v165_v18 = vmul.f32 %v164_v61, %v160_v16 }
 0x113   :  { %v172_v19 = vadd.f32 %v169_v0, %v167_v17 }
 0x114   :  { %v170_v22 = vadd.f32 %v169_v0, %v165_v18  ;;  %v317_v18 = vperm.slane %v652_v2, 2 }
 0x115   :  { %v176_v21 = vmax.f32 %v172_v19, 0.0 }
 0x116   :  { %v174_v24 = vmax.f32 %v170_v22, 0.0  ;;  %v322_v22 = vperm.slane %v652_v2, 3 }
 0x117   :  { %204 = vmatpush.msra.mxu0 %v176_v21  ;;  %569 = vmatpush.msra.mxu3 %v176_v21 }
 0x119   :  { %205 = vmatpush.msra.mxu0 %v175_v23  ;;  %570 = vmatpush.msra.mxu3 %v175_v23 }
 0x11b   :  { %206 = vmatpush.msra.mxu0 %v174_v24  ;;  %571 = vmatpush.msra.mxu3 %v174_v24 }
 0x11c   :  { %560 = vmatmul.msk.f32.vlgmr.msra.gmra.mxu3 %vm178_vm13, %v41_v25  ;;  %559 = vmatmul.msk.f32.vlgmr.msra.gmra.mxu0 %vm178_vm13, %v40_v26 }
 0x124   :  { %561 = vmatmul.msk.f32.gmra.mxu3 %vm178_vm13, %v42_v27 }
 0x12c   :  { %562 = vmatmul.msk.f32.gmra.mxu3 %vm178_vm13, %v43_v28 }
 0x199   :  { %v696_v32 = vpop.f32.mrf.mxu0 }
 0x19a   :  { %v221_v33 = vsel %vm220_vm14, %v696_v32, 0.0  ;;  %v233_v38 = vmul.f32 %v696_v32, %v696_v32 }
 0x19c   :  { %v237_v39 = vsel %vm220_vm14, %v233_v38, 0.0 }
 0x19f   :  { %v690_v29 = vpop.f32.mrf.mxu3 }
 0x1a0   :  { %v224_v40 = vsel %vm220_vm14, %v690_v29, 0.0  ;;  %v234_v43 = vmul.f32 %v690_v29, %v690_v29 }
 0x1a2   :  { %v240_v44 = vsel %vm220_vm14, %v234_v43, 0.0 }
 0x1a7   :  { %v692_v30 = vpop.f32.mrf.mxu3 }
 0x1a8   :  { %v227_v31 = vsel %vm220_vm14, %v692_v30, 0.0  ;;  %v235_v41 = vmul.f32 %v692_v30, %v692_v30 }
 0x1a9   :  { %228 = vadd.xlane.f32.xlu1 %v227_v31 }
 0x1aa   :  { %v243_v42 = vsel %vm220_vm14, %v235_v41, 0.0 }
 0x1af   :  { %v700_v34 = vpop.f32.mrf.mxu3 }
 0x1b0   :  { %v236_v35 = vmul.f32 %v700_v34, %v700_v34  ;;  %v230_v36 = vsel %vm220_vm14, %v700_v34, 0.0 }
 0x1b1   :  { %231 = vadd.xlane.f32.xlu2 %v230_v36  ;;  %222 = vadd.xlane.f32.xlu1 %v221_v33 }
 0x1b2   :  { %v246_v37 = vsel %vm220_vm14, %v236_v35, 0.0 }
 0x1b3   :  { %247 = vadd.xlane.f32.xlu0 %v246_v37 }
 0x1b9   :  { %225 = vadd.xlane.f32.xlu2 %v224_v40  ;;  %238 = vadd.xlane.f32.xlu1 %v237_v39 }
 0x1c1   :  { %244 = vadd.xlane.f32.xlu2 %v243_v42 }
 0x1c9   :  { %241 = vadd.xlane.f32.xlu2 %v240_v44 }
 0x21c   :  { %v229_v45 = vpop.xlane.xlu1 %228 }
 0x21d   :  { %v251_v60 = vmul.f32 0.0625, %v229_v45 }
 0x21f   :  { %v259_v0 = vmul.f32 %v251_v60, %v251_v60  ;;  %v267_v41 = vsub.f32 %v692_v30, %v251_v60 }
 0x224   :  { %v232_v46 = vpop.xlane.xlu2 %231  ;;  %v223_v47 = vpop.xlane.xlu1 %222 }
 0x225   :  { %v252_v48 = vmul.f32 0.0625, %v232_v46  ;;  %v718_v52 = vmul.f32 0.0625, %v223_v47 }
 0x226   :  { %v248_v49 = vpop.xlane.xlu0 %247 }
 0x227   :  { %v260_v50 = vmul.f32 %v252_v48, %v252_v48  ;;  %v256_v51 = vmul.f32 0.0625, %v248_v49  ;;  %v257_v54 = vmul.f32 %v718_v52, %v718_v52  ;;  %v268_v16 = vsub.f32 %v700_v34, %v252_v48 }
 0x228   :  { %v265_v47 = vsub.f32 %v696_v32, %v718_v52 }
 0x229   :  { %v264_v53 = vsub.f32 %v256_v51, %v260_v50 }
 0x22b   :  { %v272_v55 = vadd.f32 1e-05, %v264_v53 }
 0x22c   :  { %v226_v56 = vpop.xlane.xlu2 %225  ;;  %v239_v57 = vpop.xlane.xlu1 %238 }
 0x22d   :  { %v253_v58 = vmul.f32 0.0625, %v239_v57  ;;  %590 = vrsqrt.f32 %v272_v55  ;;  %v722_v8 = vmul.f32 0.0625, %v226_v56  ;;  %vm309_vm0 = vweird.f32 %v272_v55 }
 0x22f   :  { %v261_v59 = vsub.f32 %v253_v58, %v257_v54  ;;  %v258_v13 = vmul.f32 %v722_v8, %v722_v8  ;;  %v266_v30 = vsub.f32 %v690_v29, %v722_v8  ;;  %v44_v29 = vld [vmem:[%s829_s3 + $0x40] sm:$0xff] }
 0x231   :  { %v269_v61 = vadd.f32 1e-05, %v261_v59 }
 0x233   :  { %592 = vrsqrt.f32 %v269_v61  ;;  %v591_v62 = vpop.eup %590  ;;  %vm279_vm3 = vweird.f32 %v269_v61 }
 0x234   :  { %v245_v63 = vpop.xlane.xlu2 %244  ;;  %v304_v1 = vmul.f32 %v591_v62, %v272_v55  ;;  %vm310_vm15 = vweird.f32 %v591_v62 }
 0x235   :  { %v255_v3 = vmul.f32 0.0625, %v245_v63  ;;  %vm311_vm1 = vmor %vm309_vm0, %vm310_vm15  ;;  %v47_v63 = vld [vmem:[%s829_s3 + $0x58] sm:$0xff] }
 0x236   :  { %v305_v4 = vmul.f32 %v591_v62, %v304_v1 }
 0x237   :  { %v263_v5 = vsub.f32 %v255_v3, %v259_v0 }
 0x238   :  { %v306_v7 = vmul.f32 0.5, %v305_v4 }
 0x239   :  { %v593_v6 = vpop.eup %592  ;;  %v271_v9 = vadd.f32 1e-05, %v263_v5 }
 0x23a   :  { %v274_v10 = vmul.f32 %v593_v6, %v269_v61  ;;  %v307_v11 = vsub.f32 1.5, %v306_v7  ;;  %vm280_vm4 = vweird.f32 %v593_v6  ;;  %v45_v61 = vld [vmem:[%s829_s3 + $0x48] sm:$0xff] }
 0x23b   :  { %594 = vrsqrt.f32 %v271_v9  ;;  %vm299_vm5 = vweird.f32 %v271_v9  ;;  %vm281_vm7 = vmor %vm279_vm3, %vm280_vm4 }
 0x23c   :  { %v242_v12 = vpop.xlane.xlu2 %241  ;;  %v308_v15 = vmul.f32 %v591_v62, %v307_v11  ;;  %v275_v17 = vmul.f32 %v593_v6, %v274_v10 }
 0x23d   :  { %v254_v14 = vmul.f32 0.0625, %v242_v12 }
 0x23e   :  { %v312_v20 = vsel %vm311_vm1, %v591_v62, %v308_v15  ;;  %v276_v25 = vmul.f32 0.5, %v275_v17  ;;  %v46_v62 = vld [vmem:[%s829_s3 + $0x50] sm:$0xff] }
 0x23f   :  { %v262_v19 = vsub.f32 %v254_v14, %v258_v13  ;;  %v316_v21 = vmul.f32 %v312_v20, %v268_v16 }
 0x240   :  { %v277_v33 = vsub.f32 1.5, %v276_v25 }
 0x241   :  { %v595_v23 = vpop.eup %594  ;;  %v270_v24 = vadd.f32 1e-05, %v262_v19  ;;  %v321_v27 = vmul.f32 %v317_v18, %v316_v21 }
 0x242   :  { %v294_v26 = vmul.f32 %v595_v23, %v271_v9  ;;  %vm300_vm2 = vweird.f32 %v595_v23  ;;  %v278_v40 = vmul.f32 %v593_v6, %v277_v33 }
 0x243   :  { %596 = vrsqrt.f32 %v270_v24  ;;  %v326_v31 = vadd.f32 %v322_v22, %v321_v27  ;;  %vm301_vm6 = vmor %vm299_vm5, %vm300_vm2  ;;  %vm289_vm9 = vweird.f32 %v270_v24 }
 0x244   :  { %v295_v28 = vmul.f32 %v595_v23, %v294_v26  ;;  %v282_v46 = vsel %vm281_vm7, %v593_v6, %v278_v40 }
 0x245   :  { %v330_v34 = vmax.f32 %v326_v31, 0.0  ;;  %v313_v51 = vmul.f32 %v282_v46, %v265_v47 }
 0x246   :  { %v296_v35 = vmul.f32 0.5, %v295_v28 }
 0x247   :  { %355 = vmatpush.msrb.mxu0 %v330_v34  ;;  %572 = vmatpush.msra.mxu1 %v330_v34  ;;  %v318_v57 = vmul.f32 %v317_v18, %v313_v51 }
 0x248   :  { %v297_v36 = vsub.f32 1.5, %v296_v35 }
 0x249   :  { %v597_v37 = vpop.eup %596  ;;  %v323_v32 = vadd.f32 %v322_v22, %v318_v57 }
 0x24a   :  { %v284_v38 = vmul.f32 %v597_v37, %v270_v24  ;;  %v298_v39 = vmul.f32 %v595_v23, %v297_v36  ;;  %vm290_vm8 = vweird.f32 %v597_v37 }
 0x24b   :  { %vm291_vm10 = vmor %vm289_vm9, %vm290_vm8  ;;  %v327_v60 = vmax.f32 %v323_v32, 0.0 }
 0x24c   :  { %v285_v42 = vmul.f32 %v597_v37, %v284_v38  ;;  %v302_v43 = vsel %vm301_vm6, %v595_v23, %v298_v39 }
 0x24d   :  { %v315_v44 = vmul.f32 %v302_v43, %v267_v41 }
 0x24e   :  { %v286_v45 = vmul.f32 0.5, %v285_v42 }
 0x24f   :  { %v320_v48 = vmul.f32 %v317_v18, %v315_v44 }
 0x250   :  { %v287_v49 = vsub.f32 1.5, %v286_v45 }
 0x251   :  { %v325_v50 = vadd.f32 %v322_v22, %v320_v48 }
 0x252   :  { %v288_v53 = vmul.f32 %v597_v37, %v287_v49 }
 0x253   :  { %v329_v54 = vmax.f32 %v325_v50, 0.0 }
 0x254   :  { %v292_v55 = vsel %vm291_vm10, %v597_v37, %v288_v53 }
 0x255   :  { %356 = vmatpush.msrb.mxu0 %v329_v54  ;;  %573 = vmatpush.msra.mxu1 %v329_v54  ;;  %v314_v56 = vmul.f32 %v292_v55, %v266_v30 }
 0x257   :  { %v319_v58 = vmul.f32 %v317_v18, %v314_v56  ;;  %v19_v56 = vstv %s831_s0 }
 0x258   :  { %vm25_vm4 = vweird.f32 %v19_v56 }
 0x259   :  { %v324_v59 = vadd.f32 %v322_v22, %v319_v58 }
 0x25b   :  { %v328_v52 = vmax.f32 %v324_v59, 0.0 }
 0x25d   :  { %357 = vmatpush.msrb.mxu0 %v328_v52  ;;  %574 = vmatpush.msra.mxu1 %v328_v52 }
 0x25f   :  { %358 = vmatpush.msrb.mxu0 %v327_v60  ;;  %575 = vmatpush.msra.mxu1 %v327_v60 }
 0x260   :  { %564 = vmatmul.msk.f32.vlgmr.msra.gmra.mxu1 %vm178_vm13, %v45_v61  ;;  %563 = vmatmul.msk.f32.vlgmr.msrb.gmra.mxu0 %vm178_vm13, %v44_v29 }
 0x268   :  { %565 = vmatmul.msk.f32.gmra.mxu1 %vm178_vm13, %v46_v62 }
 0x270   :  { %566 = vmatmul.msk.f32.gmra.mxu1 %vm178_vm13, %v47_v63 }
 0x2dd   :  { %v750_v0 = vpop.f32.mrf.mxu1  ;;  %v765_v9 = vpop.f32.mrf.mxu0 }
 0x2de   :  { %v375_v1 = vsel %vm220_vm14, %v750_v0, 0.0  ;;  %v385_v3 = vmul.f32 %v750_v0, %v750_v0  ;;  %v384_v12 = vmul.f32 %v765_v9, %v765_v9  ;;  %v372_v16 = vsel %vm220_vm14, %v765_v9, 0.0 }
 0x2df   :  { %376 = vadd.xlane.f32.xlu0 %v375_v1 }
 0x2e0   :  { %v391_v5 = vsel %vm220_vm14, %v385_v3, 0.0  ;;  %v388_v14 = vsel %vm220_vm14, %v384_v12, 0.0  ;;  %v31_v12 = vand.u32 2147483648, %v19_v56 }
 0x2e5   :  { %v756_v4 = vpop.f32.mrf.mxu1 }
 0x2e6   :  { %v378_v6 = vsel %vm220_vm14, %v756_v4, 0.0  ;;  %v386_v7 = vmul.f32 %v756_v4, %v756_v4 }
 0x2e7   :  { %392 = vadd.xlane.f32.xlu0 %v391_v5  ;;  %379 = vadd.xlane.f32.xlu1 %v378_v6 }
 0x2e8   :  { %v394_v10 = vsel %vm220_vm14, %v386_v7, 0.0 }
 0x2ed   :  { %v763_v8 = vpop.f32.mrf.mxu1 }
 0x2ee   :  { %v381_v11 = vsel %vm220_vm14, %v763_v8, 0.0  ;;  %v387_v13 = vmul.f32 %v763_v8, %v763_v8 }
 0x2ef   :  { %395 = vadd.xlane.f32.xlu1 %v394_v10  ;;  %382 = vadd.xlane.f32.xlu2 %v381_v11 }
 0x2f0   :  { %v397_v15 = vsel %vm220_vm14, %v387_v13, 0.0 }
 0x2f7   :  { %398 = vadd.xlane.f32.xlu2 %v397_v15  ;;  %389 = vadd.xlane.f32.xlu1 %v388_v14 }
 0x2ff   :  { %373 = vadd.xlane.f32.xlu2 %v372_v16 }
 0x352   :  { %v377_v17 = vpop.xlane.xlu0 %376 }
 0x353   :  { %v778_v18 = vmul.f32 0.0625, %v377_v17 }
 0x355   :  { %v409_v21 = vmul.f32 %v778_v18, %v778_v18  ;;  %v417_v1 = vsub.f32 %v750_v0, %v778_v18  ;;  %v29_v0 = vand.u32 2147483647, %v19_v56 }
 0x357   :  { %vm30_vm8 = vcmp.eq.f32.partialorder %v29_v0, 8.507059e+37 }
 0x35a   :  { %v393_v19 = vpop.xlane.xlu0 %392  ;;  %v380_v20 = vpop.xlane.xlu1 %379 }
 0x35b   :  { %v405_v22 = vmul.f32 0.0625, %v393_v19  ;;  %v402_v25 = vmul.f32 0.0625, %v380_v20 }
 0x35d   :  { %v413_v23 = vsub.f32 %v405_v22, %v409_v21  ;;  %v410_v28 = vmul.f32 %v402_v25, %v402_v25  ;;  %v418_v5 = vsub.f32 %v756_v4, %v402_v25  ;;  %v468_v4 = vperm.slane %v652_v2, 4 }
 0x35f   :  { %v421_v24 = vadd.f32 1e-05, %v413_v23  ;;  %v32_v23 = vor.u32 1.1754944e-38, %v31_v12 }
 0x361   :  { %598 = vrsqrt.f32 %v421_v24  ;;  %vm440_vm0 = vweird.f32 %v421_v24 }
 0x362   :  { %v396_v26 = vpop.xlane.xlu1 %395  ;;  %v383_v27 = vpop.xlane.xlu2 %382 }
 0x363   :  { %v406_v31 = vmul.f32 0.0625, %v396_v26  ;;  %v784_v36 = vmul.f32 0.0625, %v383_v27  ;;  %v473_v27 = vperm.slane %v652_v2, 5 }
 0x365   :  { %v414_v33 = vsub.f32 %v406_v31, %v410_v28  ;;  %v411_v39 = vmul.f32 %v784_v36, %v784_v36  ;;  %v419_v16 = vsub.f32 %v763_v8, %v784_v36 }
 0x367   :  { %v782_v35 = vpop.eup %598  ;;  %v422_v34 = vadd.f32 1e-05, %v414_v33 }
 0x368   :  { %v435_v37 = vmul.f32 %v782_v35, %v421_v24  ;;  %vm441_vm12 = vweird.f32 %v782_v35 }
 0x369   :  { %600 = vrsqrt.f32 %v422_v34  ;;  %vm450_vm14 = vweird.f32 %v422_v34  ;;  %vm801_vm1 = vmor %vm440_vm0, %vm441_vm12  ;;  %vm553_vm0 = vcmask 123905  }
 0x36a   :  { %v399_v38 = vpop.xlane.xlu2 %398  ;;  %v436_v42 = vmul.f32 %v782_v35, %v435_v37  ;;  %v390_v46 = vpop.xlane.xlu1 %389 }
 0x36b   :  { %v407_v40 = vmul.f32 0.0625, %v399_v38  ;;  %v404_v51 = vmul.f32 0.0625, %v390_v46 }
 0x36c   :  { %v437_v47 = vmul.f32 0.5, %v436_v42 }
 0x36d   :  { %v415_v41 = vsub.f32 %v407_v40, %v411_v39 }
 0x36e   :  { %v438_v54 = vsub.f32 1.5, %v437_v47  ;;  %v48_v47 = vld [vmem:[%s829_s3 + $0x60] sm:$0x3] }
 0x36f   :  { %v601_v43 = vpop.eup %600  ;;  %v423_v44 = vadd.f32 1e-05, %v415_v41 }
 0x370   :  { %v445_v45 = vmul.f32 %v601_v43, %v422_v34  ;;  %vm451_vm11 = vweird.f32 %v601_v43  ;;  %v439_v61 = vmul.f32 %v782_v35, %v438_v54 }
 0x371   :  { %602 = vrsqrt.f32 %v423_v44  ;;  %vm452_vm15 = vmor %vm450_vm14, %vm451_vm11  ;;  %vm460_vm3 = vweird.f32 %v423_v44 }
 0x372   :  { %v446_v48 = vmul.f32 %v601_v43, %v445_v45  ;;  %v374_v49 = vpop.xlane.xlu2 %373  ;;  %604 = vrcp.f32 %v19_v56  ;;  %v443_v7 = vsel %vm801_vm1, %v782_v35, %v439_v61  ;;  %vm551_vm1 = vcmask 128000  }
 0x373   :  { %v790_v50 = vmul.f32 0.0625, %v374_v49  ;;  %v465_v17 = vmul.f32 %v443_v7, %v417_v1  ;;  %v536_v49 = vld [vmem:[%s832_s1] sm:$0x3f] }
 0x374   :  { %v447_v53 = vmul.f32 0.5, %v446_v48 }
 0x375   :  { %v408_v30 = vmul.f32 %v790_v50, %v790_v50  ;;  %v470_v28 = vmul.f32 %v468_v4, %v465_v17  ;;  %v416_v40 = vsub.f32 %v765_v9, %v790_v50  ;;  %v539_v50 = vsub.f32 1.0, %v536_v49 }
 0x376   :  { %v448_v55 = vsub.f32 1.5, %v447_v53 }
 0x377   :  { %v603_v57 = vpop.eup %602  ;;  %v412_v58 = vsub.f32 %v404_v51, %v408_v30  ;;  %v475_v38 = vadd.f32 %v473_v27, %v470_v28 }
 0x378   :  { %v455_v59 = vmul.f32 %v603_v57, %v423_v44  ;;  %v449_v32 = vmul.f32 %v601_v43, %v448_v55  ;;  %v605_v63 = vpop.eup %604  ;;  %vm461_vm2 = vweird.f32 %v603_v57 }
 0x379   :  { %v420_v52 = vadd.f32 1e-05, %v412_v58  ;;  %v21_v10 = vmul.f32 %v605_v63, %v19_v56  ;;  %vm26_vm5 = vweird.f32 %v605_v63  ;;  %vm462_vm6 = vmor %vm460_vm3, %vm461_vm2  ;;  %v479_v42 = vmax.f32 %v475_v38, 0.0 }
 0x37a   :  { %v456_v60 = vmul.f32 %v603_v57, %v455_v59  ;;  %v453_v62 = vsel %vm452_vm15, %v601_v43, %v449_v32  ;;  %vm27_vm7 = vmor %vm25_vm4, %vm26_vm5 }
 0x37b   :  { %606 = vrsqrt.f32 %v420_v52  ;;  %v466_v11 = vmul.f32 %v453_v62, %v418_v5  ;;  %v22_v14 = vsub.f32 1.0, %v21_v10  ;;  %vm430_vm10 = vweird.f32 %v420_v52 }
 0x37c   :  { %v457_v29 = vmul.f32 0.5, %v456_v60 }
 0x37d   :  { %v23_v20 = vmul.f32 %v605_v63, %v22_v14  ;;  %v471_v22 = vmul.f32 %v468_v4, %v466_v11 }
 0x37e   :  { %v458_v6 = vsub.f32 1.5, %v457_v29 }
 0x37f   :  { %v24_v25 = vadd.f32 %v605_v63, %v23_v20  ;;  %v476_v35 = vadd.f32 %v473_v27, %v471_v22 }
 0x380   :  { %v459_v13 = vmul.f32 %v603_v57, %v458_v6 }
 0x381   :  { %v607_v15 = vpop.eup %606  ;;  %v28_v31 = vsel %vm27_vm7, %v605_v63, %v24_v25  ;;  %v480_v41 = vmax.f32 %v476_v35, 0.0 }
 0x382   :  { %v425_v18 = vmul.f32 %v607_v15, %v420_v52  ;;  %v463_v19 = vsel %vm462_vm6, %v603_v57, %v459_v13  ;;  %v33_v34 = vsel %vm30_vm8, %v32_v23, %v28_v31  ;;  %vm431_vm9 = vweird.f32 %v607_v15 }
 0x383   :  { %v467_v21 = vmul.f32 %v463_v19, %v419_v16  ;;  %576 = vpush %v33_v34  ;;  %vm432_vm11 = vmor %vm430_vm10, %vm431_vm9 }
 0x384   :  { %v426_v24 = vmul.f32 %v607_v15, %v425_v18 }
 0x385   :  { %v472_v26 = vmul.f32 %v468_v4, %v467_v21 }
 0x386   :  { %v427_v8 = vmul.f32 0.5, %v426_v24 }
 0x387   :  { %v477_v33 = vadd.f32 %v473_v27, %v472_v26 }
 0x388   :  { %v428_v36 = vsub.f32 1.5, %v427_v8 }
 0x389   :  { %v481_v37 = vmax.f32 %v477_v33, 0.0 }
 0x38a   :  { %v429_v39 = vmul.f32 %v607_v15, %v428_v36 }
 0x38b   :  { %497 = vmatpush.msra.mxu2 %v481_v37 }
 0x38c   :  { %v433_v2 = vsel %vm432_vm11, %v607_v15, %v429_v39 }
 0x38d   :  { %498 = vmatpush.msra.mxu2 %v480_v41  ;;  %v464_v43 = vmul.f32 %v433_v2, %v416_v40 }
 0x38f   :  { %499 = vmatpush.msra.mxu2 %v479_v42  ;;  %v469_v44 = vmul.f32 %v468_v4, %v464_v43 }
 0x391   :  { %v474_v45 = vadd.f32 %v473_v27, %v469_v44 }
 0x393   :  { %v478_v46 = vmax.f32 %v474_v45, 0.0 }
 0x395   :  { %500 = vmatpush.msra.mxu2 %v478_v46 }
 0x396   :  { %567 = vmatmul.msk.f32.vlgmr.msra.gmra.mxu2 %vm178_vm13, %v48_v47 }
 0x3b4   :  { %s577_s3 = spop %576 }
 0x3b5   :  { %v545_v6 = vstv %s577_s3 }
 0x419   :  { %v502_v48 = vpop.f32.mrf.mxu2 }
 0x41a   :  { %v505_v9 = vmul.f32 1.442695, %v502_v48 }
 0x41c   :  { %608 = vpow2.f32 %v505_v9 }
 0x41d   :  { %610 = vlog2.f32 %v536_v49 }
 0x41e   :  { %612 = vlog2.f32 %v539_v50 }
 0x422   :  { %v609_v51 = vpop.eup %608 }
 0x423   :  { %v508_v53 = vrot.slane %v609_v51, 1  ;;  %v529_v30 = vadd.f32 1e-06, %v609_v51  ;;  %v611_v56 = vpop.eup %610 }
 0x424   :  { %v613_v57 = vpop.eup %612  ;;  %v538_v32 = vmul.f32 0.6931472, %v611_v56 }
 0x425   :  { %v510_v54 = vadd.f32 %v609_v51, %v508_v53  ;;  %614 = vlog2.f32 %v529_v30  ;;  %v541_v52 = vmul.f32 0.6931472, %v613_v57 }
 0x427   :  { %v512_v55 = vrot.slane %v510_v54, 7  ;;  %v542_v63 = vsub.f32 %v538_v32, %v541_v52 }
 0x429   :  { %616 = vrcp.f32 %v512_v55  ;;  %v525_v5 = vand.u32 2147483648, %v512_v55  ;;  %v523_v10 = vand.u32 2147483647, %v512_v55  ;;  %vm519_vm12 = vweird.f32 %v512_v55 }
 0x42b   :  { %v615_v58 = vpop.eup %614  ;;  %v526_v14 = vor.u32 1.1754944e-38, %v525_v5  ;;  %vm524_vm15 = vcmp.eq.f32.partialorder %v523_v10, 8.507059e+37 }
 0x42c   :  { %v531_v59 = vmul.f32 0.6931472, %v615_v58 }
 0x42e   :  { %v533_v60 = vrot.slane %v531_v59, 7 }
 0x42f   :  { %v617_v61 = vpop.eup %616 }
 0x430   :  { %v515_v29 = vmul.f32 %v617_v61, %v512_v55  ;;  %v535_v62 = vsub.f32 %v531_v59, %v533_v60  ;;  %vm520_vm13 = vweird.f32 %v617_v61 }
 0x431   :  { %vm521_vm14 = vmor %vm519_vm12, %vm520_vm13 }
 0x432   :  { %v516_v1 = vsub.f32 1.0, %v515_v29  ;;  %v543_v3 = vperm.slane %v535_v62, 1 }
 0x434   :  { %v517_v7 = vmul.f32 %v617_v61, %v516_v1  ;;  %v544_v11 = vadd.f32 %v543_v3, %v542_v63 }
 0x436   :  { %v518_v12 = vadd.f32 %v617_v61, %v517_v7  ;;  %v546_v13 = vmul.f32 %v545_v6, %v544_v11 }
 0x438   :  { %v522_v0 = vsel %vm521_vm14, %v617_v61, %v518_v12  ;;  %v547_v15 = vmul.f32 0.5, %v546_v13 }
 0x439   :  { %v527_v16 = vsel %vm524_vm15, %v526_v14, %v522_v0 }
 0x43a   :  { %v528_v4 = vmul.f32 %v609_v51, %v527_v16  ;;  %618 = vtanh.f32 %v547_v15 }
 0x43c   :  { %554 = vst.msk [vmem:[%s833_s4 + $0x5] sm:$0x2] %vm553_vm0, %v528_v4 }
 0x440   :  { %v619_v17 = vpop.eup %618 }
 0x441   :  { %v549_v18 = vmul.f32 0.5, %v619_v17 }
 0x443   :  { %v550_v19 = vadd.f32 0.5, %v549_v18 }
 0x445   :  { %552 = vst.msk [vmem:[%s833_s4] sm:$0x3f] %vm551_vm1, %v550_v19 }

</bundles_post_ra>
